<compile_context>
chip_gen: v7x
topology: tpu7x:2x2x1
jax: 0.10.0
libtpu: 0.0.40
codegen_flags: <defaults>
</compile_context>

<pallas_src>
import jax
import jax.numpy as jnp
from jax.experimental import pallas as pl
from jax.experimental.pallas import tpu as pltpu


def expand_toeplitz(diag, lower_diags, upper_diags):
    """JAX mirror of the PyTorch expand_toeplitz (bit-for-bit same layout).

    PyTorch: pattern = cat([upper_diags, diag, lower_diags]); the i-th stacked
    row is pattern[d - i : d - i + dim], i.e. T[i, j] = pattern[d - i + j].
    """
    pattern = jnp.concatenate([upper_diags, diag, lower_diags], axis=0)
    d = lower_diags.shape[0]
    i = jnp.arange(d + 1)[:, None]
    j = jnp.arange(d + 1)[None, :]
    return pattern[d - i + j]


def toeplitz_matmul_kernel(t_ref, x_ref, o_ref):
    # t_ref: (D, D) resident tile; x_ref/o_ref: (tile_b, D, tile_n) tiles.
    t = t_ref[...]
    # tile_b is small (<= 8) and static -> unrolled independent
    # (D, D) x (D, tile_n) MXU matmuls.  Partial boundary blocks (batch or lane)
    # compute on padded garbage which Pallas masks out on store.
    for b in range(x_ref.shape[0]):
        o_ref[b] = jnp.dot(
            t, x_ref[b], preferred_element_type=jnp.float32
        ).astype(o_ref.dtype)


def _vmem_capacity_bytes():
    try:
        info = pltpu.get_tpu_info()
        return int(getattr(info, "vmem_capacity_bytes", 64 << 20))
    except Exception:
        # Conservative (v7x-sized) fallback if the query is unavailable.
        return 64 << 20


def toeplitz_block_forward(t, x, *, allow_xla_fallback=True):
    """y[b] = T @ x[b] for every batch b, as one Pallas call."""
    B, D, N = x.shape
    assert t.shape == (D, D)
    itemsize = jnp.dtype(x.dtype).itemsize
    total_x_bytes = B * D * N * itemsize

    # Tiny problems: fixed pallas_call / single-grid-step overhead dominates;
    # let XLA fuse it instead.
    if allow_xla_fallback and total_x_bytes < (1 << 20):
        return jnp.einsum("ij,bjk->bik", t, x).astype(x.dtype)

    vmem_cap = _vmem_capacity_bytes()
    # Per-x-block budget ~ 1/8 of physical VMEM: x + y blocks, each
    # double-buffered, stay around half of VMEM with headroom for T/scratch.
    x_block_budget = max(1 << 20, vmem_cap // 8)

    # --- batch tiling: fold up to 8 batches per block (static unroll inside the
    # kernel); partial last batch block is handled by masked writes.
    tile_b = min(B, 8)
    grid_b = pl.cdiv(B, tile_b)

    # --- lane (N) tiling: largest 128-multiple tile within the VMEM budget.
    per_lane_bytes = max(1, tile_b * D * itemsize)
    max_tile_n = max(128, (x_block_budget // per_lane_bytes) // 128 * 128)
    if N <= max_tile_n:
        tile_n = N  # full lane extent (valid even when N % 128 != 0)
    else:
        # 128-aligned tile; cdiv grid masks the partial last lane block.
        tile_n = max_tile_n
    grid_n = pl.cdiv(N, tile_n)

    # v7x has 2 TensorCores: make sure the parallel grid has >= 2 steps when the
    # problem would otherwise be a single block, so both cores stream HBM.
    if grid_b * grid_n == 1 and N >= 256 and N % 128 == 0:
        tile_n = ((N // 2 + 127) // 128) * 128
        grid_n = pl.cdiv(N, tile_n)

    grid = (grid_b, grid_n)

    # Explicit scoped-VMEM limit: covers double-buffered x + y blocks (+ T)
    # with headroom, never relying on the (generation-dependent) default.
    block_bytes = tile_b * D * tile_n * itemsize
    live_bytes = 4 * block_bytes + 2 * D * D * jnp.dtype(t.dtype).itemsize
    vmem_limit = min(
        int(vmem_cap * 0.8),
        max(int(1.5 * live_bytes) + (1 << 20), 16 << 20),
    )

    cost = pl.CostEstimate(
        flops=2 * B * D * D * N,
        transcendentals=0,
        bytes_accessed=(B * D * N * itemsize) * 2 + D * D * jnp.dtype(t.dtype).itemsize,
    )

    return pl.pallas_call(
        toeplitz_matmul_kernel,
        out_shape=jax.ShapeDtypeStruct((B, D, N), x.dtype),
        grid=grid,
        in_specs=[
            # Toeplitz matrix: resident across all grid steps (constant index).
            pl.BlockSpec((D, D), lambda b, n: (0, 0)),
            # Lane-dense x tile.
            pl.BlockSpec((tile_b, D, tile_n), lambda b, n: (b, 0, n)),
        ],
        out_specs=pl.BlockSpec((tile_b, D, tile_n), lambda b, n: (b, 0, n)),
        compiler_params=pltpu.CompilerParams(
            # Both axes independent -> v7x megacore shards either; no-op on
            # single-TC v5e/v6e.
            dimension_semantics=("parallel", "parallel"),
            vmem_limit_bytes=int(vmem_limit),
        ),
        cost_estimate=cost,
    )(t, x)


if __name__ == "__main__":
    dim = 16       # Toeplitz dimension (ToeplitzBlock(dim))
    batch = 2
    feat = 128     # trailing feature axis of x (lane-dense)

    key = jax.random.PRNGKey(0)
    k_diag, k_low, k_up, k_x = jax.random.split(key, 4)

    # Deterministic "parameters" (shapes match the module's __init__).
    diag = jax.random.normal(k_diag, (1,), dtype=jnp.float32)
    lower_diags = jax.random.normal(k_low, (dim - 1,), dtype=jnp.float32)
    upper_diags = jax.random.normal(k_up, (dim - 1,), dtype=jnp.float32)

    x = jax.random.normal(k_x, (batch, dim, feat), dtype=jnp.float32)

    # Structural check of the Toeplitz expansion against the exact PyTorch
    # construction (stack of pattern slices) on a tiny case.
    d3 = jnp.array([7.0]); l3 = jnp.array([1.0, 2.0]); u3 = jnp.array([3.0, 4.0])
    t3_ref = jnp.stack(
        [jnp.concatenate([u3, d3, l3])[2 - i : 5 - i] for i in range(3)], axis=0
    )
    assert jnp.array_equal(expand_toeplitz(d3, l3, u3), t3_ref), "expansion flip"

    # diagonals() returns [diag + 1, lower_diags, upper_diags]
    t = expand_toeplitz(diag + 1.0, lower_diags, upper_diags)

    # Force the Pallas path (the tiny-problem einsum fallback would otherwise
    # trigger at this size).
    y = toeplitz_block_forward(t, x, allow_xla_fallback=False)
    y = jax.block_until_ready(y)

    # Pure-JAX reference of torch.matmul(T, x) for batched x.
    y_ref = jnp.einsum("ij,bjk->bik", t, x)
    assert jnp.allclose(y, y_ref, atol=1e-5, rtol=1e-5), "mismatch vs reference"

    print("KERNEL_OK")
</pallas_src>

<mosaic_0001>
module attributes {stable_mosaic.version = 11 : i64} {
  func.func @toeplitz_matmul_kernel(%arg0: i32, %arg1: i32, %arg2: memref<16x16xf32, #tpu.memory_space<vmem>>, %arg3: memref<2x16x128xf32, #tpu.memory_space<vmem>>, %arg4: memref<2x16x128xf32, #tpu.memory_space<vmem>>) attributes {dimension_semantics = [#tpu.dimension_semantics<parallel>, #tpu.dimension_semantics<parallel>], iteration_bounds = array<i64: 1, 1>, scalar_prefetch = 0 : i64, scratch_operands = 0 : i64, tpu.core_type = #tpu.core_type<tc>, window_params = [{pipeline_mode = #tpu.pipeline_mode<synchronous>, transform_indices = @transform_0, window_bounds = array<i64: 16, 16>}, {transform_indices = @transform_1, window_bounds = array<i64: 2, 16, 128>}, {transform_indices = @transform_2, window_bounds = array<i64: 2, 16, 128>}]} {
    %c0 = arith.constant 0 : index
    %c0_0 = arith.constant 0 : index
    %0 = vector.load %arg2[%c0, %c0_0] : memref<16x16xf32, #tpu.memory_space<vmem>>, vector<16x16xf32>
    %c0_1 = arith.constant 0 : index
    %c0_2 = arith.constant 0 : index
    %c0_3 = arith.constant 0 : index
    %1 = vector.load %arg3[%c0_1, %c0_2, %c0_3] : memref<2x16x128xf32, #tpu.memory_space<vmem>>, vector<1x16x128xf32>
    %2 = vector.shape_cast %1 : vector<1x16x128xf32> to vector<16x128xf32>
    %cst = arith.constant dense<0.000000e+00> : vector<16x128xf32>
    %3 = tpu.matmul %0, %2, %cst {dimension_numbers = #tpu.dot_dimension_numbers<[1], [0], [0], [1], [0, 0, 1, 1], [], []>} : vector<16x16xf32>, vector<16x128xf32>, vector<16x128xf32> -> vector<16x128xf32>
    %c0_4 = arith.constant 0 : index
    %c0_5 = arith.constant 0 : index
    %c0_6 = arith.constant 0 : index
    %4 = vector.load %arg4[%c0_4, %c0_5, %c0_6] : memref<2x16x128xf32, #tpu.memory_space<vmem>>, vector<1x16x128xf32>
    %5 = vector.shape_cast %4 : vector<1x16x128xf32> to vector<16x128xf32>
    %6 = vector.shape_cast %3 : vector<16x128xf32> to vector<1x16x128xf32>
    tpu.vector_store %arg4[%c0_4, %c0_5, %c0_6], %6 {strides = array<i32>} : memref<2x16x128xf32, #tpu.memory_space<vmem>>, vector<1x16x128xf32>,
    %c1 = arith.constant 1 : index
    %c0_7 = arith.constant 0 : index
    %c0_8 = arith.constant 0 : index
    %7 = vector.load %arg3[%c1, %c0_7, %c0_8] : memref<2x16x128xf32, #tpu.memory_space<vmem>>, vector<1x16x128xf32>
    %8 = vector.shape_cast %7 : vector<1x16x128xf32> to vector<16x128xf32>
    %cst_9 = arith.constant dense<0.000000e+00> : vector<16x128xf32>
    %9 = tpu.matmul %0, %8, %cst_9 {dimension_numbers = #tpu.dot_dimension_numbers<[1], [0], [0], [1], [0, 0, 1, 1], [], []>} : vector<16x16xf32>, vector<16x128xf32>, vector<16x128xf32> -> vector<16x128xf32>
    %c1_10 = arith.constant 1 : index
    %c0_11 = arith.constant 0 : index
    %c0_12 = arith.constant 0 : index
    %10 = vector.load %arg4[%c1_10, %c0_11, %c0_12] : memref<2x16x128xf32, #tpu.memory_space<vmem>>, vector<1x16x128xf32>
    %11 = vector.shape_cast %10 : vector<1x16x128xf32> to vector<16x128xf32>
    %12 = vector.shape_cast %9 : vector<16x128xf32> to vector<1x16x128xf32>
    tpu.vector_store %arg4[%c1_10, %c0_11, %c0_12], %12 {strides = array<i32>} : memref<2x16x128xf32, #tpu.memory_space<vmem>>, vector<1x16x128xf32>,
    return
  }
  func.func @transform_0(%arg0: i32, %arg1: i32) -> (i32, i32) {
    %c0_i32 = arith.constant 0 : i32
    %c0_i32_0 = arith.constant 0 : i32
    %c0_i32_1 = arith.constant 0 : i32
    return %c0_i32, %c0_i32_0 : i32, i32
  }
  func.func @transform_1(%arg0: i32, %arg1: i32) -> (i32, i32, i32) {
    %c0_i32 = arith.constant 0 : i32
    %c0_i32_0 = arith.constant 0 : i32
    return %arg0, %c0_i32, %arg1 : i32, i32, i32
  }
  func.func @transform_2(%arg0: i32, %arg1: i32) -> (i32, i32, i32) {
    %c0_i32 = arith.constant 0 : i32
    %c0_i32_0 = arith.constant 0 : i32
    return %arg0, %c0_i32, %arg1 : i32, i32, i32
  }
}

</mosaic_0001>

<bundles_post_ra>
// kernel: tpu_custom_call.1
= control target key start
LH: loop header
LB: loop body
LE: loop exit
PB: predicated region body
PF: predicated region fallthrough
CT: control target
= control target key end

     0   :  { %7 = vsyncpa [#allocation3], 0  ;;  %s407_s0 = inlined_call_operand.hbm [shape: f32[16,16], index: 0, kind: input, shape index: {}]   ;;  %s408_s1 = inlined_call_operand.hbm [shape: f32[2,16,128], index: 1, kind: input, shape index: {}]   ;;  %s409_s2 = inlined_call_operand.hbm [shape: f32[2,16,128], index: 2, kind: output, shape index: {}]  }
   0x1   :  { %8 = vsyncpa [#allocation6], 0 }
   0x2   :  { %9 = vsyncpa [#allocation4], 0  ;;  %s338_s9 = smov [#allocation2]   ;;  %s266_s13 = scalar_lea.hbm %s407_s0, 256 }
   0x3   :  { %s15_s10 = sshll.u32 %s338_s9, 4  ;;  %p267_p0 = scmp.ne.s32.totalorder %s407_s0, %s266_s13  ;;  %s16_s10 = int_to_ptr.vmem [resolvable:$true] %s15_s10 }
   0x4   :  { %p270_p1 = scmp.lt.u32.totalorder %s266_s13, %s407_s0 }
   0x6   :  { %p272_p2 = pnand %p270_p1, %p267_p0 }
   0x8   :  { %275 = shalt.err (!%p272_p2)
}
   0x9   :  { %s276_s18 = scalar_lea.vmem %s16_s10, 256  ;;  %p281_p4 = scmp.lt.s32.totalorder %s16_s10, %s16_s10 }
   0xa   :  { %p277_p3 = scmp.ne.s32.totalorder %s16_s10, %s276_s18  ;;  %p282_p5 = scmp.lt.s32.totalorder %s276_s18, %s276_s18 }
   0xc   :  { %p283_p6 = por %p282_p5, %p281_p4 }
   0xe   :  { %p284_p7 = pnand %p283_p6, %p277_p3 }
  0x10   :  { %287 = shalt.err (!%p284_p7)
}
  0x11   :  { %s339_s19 = smov 128   ;;  %s340_s20 = smov 8  }
  0x12   :  { %21 = dma.hbm_to_vmem [thread:$0]  %s407_s0, 256, %s16_s10, [#allocation3], %s339_s19, %s339_s19, %s340_s20  }
  0x13   :  { %s341_s23 = smov [#allocation5]   ;;  %s288_s27 = scalar_lea.hbm %s408_s1, 512 }
  0x14   :  { %s27_s24 = sshll.u32 %s341_s23, 4  ;;  %p289_p8 = scmp.ne.s32.totalorder %s408_s1, %s288_s27  ;;  %s28_s24 = int_to_ptr.vmem [resolvable:$true] %s27_s24 }
  0x15   :  { %p292_p9 = scmp.lt.u32.totalorder %s288_s27, %s408_s1 }
  0x17   :  { %p294_p10 = pnand %p292_p9, %p289_p8 }
  0x19   :  { %297 = shalt.err (!%p294_p10)
}
  0x1a   :  { %s298_s4 = scalar_lea.vmem %s28_s24, 512  ;;  %p303_p12 = scmp.lt.s32.totalorder %s28_s24, %s28_s24 }
  0x1b   :  { %p299_p11 = scmp.ne.s32.totalorder %s28_s24, %s298_s4  ;;  %p304_p13 = scmp.lt.s32.totalorder %s298_s4, %s298_s4 }
  0x1d   :  { %p305_p0 = por %p304_p13, %p303_p12 }
  0x1f   :  { %p306_p1 = pnand %p305_p0, %p299_p11 }
  0x21   :  { %309 = shalt.err (!%p306_p1)
}
  0x22   :  { %33 = dma.hbm_to_vmem [thread:$0]  %s408_s1, 512, %s28_s24, [#allocation6], %s339_s19, %s339_s19, %s340_s20  }
  0x23   :  { %332 = dma.done.wait [#allocation3], 256  }
  0x24   :  { %333 = vsyncadd [#allocation3], 4294967040 }
  0x25   :  { %334 = dma.done.wait [#allocation6], 512  }
  0x26   :  { %335 = vsyncadd [#allocation6], 4294966784  ;;  %vm44_vm0 = vcmask 130048   ;;  %v42_v0 = vld [vmem:[#allocation5] sm:$0xff]  ;;  %v43_v1 = vld [vmem:[#allocation5 + $0x8] sm:$0xff]  ;;  %s342_s1 = smov [#allocation7]  }
  0x27   :  { %v129_v2 = vld [vmem:[#allocation5 + $0x10] sm:$0xff]  ;;  %v253_v3 = vpack.c.bf16 %v43_v1, %v42_v0  ;;  %v130_v4 = vld [vmem:[#allocation5 + $0x18] sm:$0xff]  ;;  %s214_s6 = sshll.u32 %s342_s1, 4  ;;  %s215_s6 = int_to_ptr.vmem [resolvable:$true] %s214_s6 }
  0x28   :  { %v40_v5 = vld [vmem:[#allocation2] sm:$0xff]  ;;  %v257_v6 = vpack.c.bf16 %v130_v4, %v129_v2  ;;  %v41_v7 = vld [vmem:[#allocation2 + $0x8] sm:$0xff]  ;;  %s310_s7 = scalar_lea.vmem %s215_s6, 512  ;;  %p315_p3 = scmp.lt.s32.totalorder %s215_s6, %s215_s6 }
  0x29   :  { %243 = vmatprep.mubr.msk.f32.mxu0 %vm44_vm0, %v40_v5  ;;  %250 = vmatprep.mubr.msk.f32.mxu1 %vm44_vm0, %v40_v5  ;;  %p311_p2 = scmp.ne.s32.totalorder %s215_s6, %s310_s7  ;;  %p316_p4 = scmp.lt.s32.totalorder %s310_s7, %s310_s7 }
  0x2a   :  { %254 = vmatprep.subr.bf16.mxu0 %v253_v3  ;;  %258 = vmatprep.subr.bf16.mxu1 %v257_v6 }
  0x2b   :  { %256 = vmatpush3.bf16.msra.mxu0 %v253_v3  ;;  %260 = vmatpush3.bf16.msra.mxu1 %v257_v6  ;;  %p317_p5 = por %p316_p4, %p315_p3 }
  0x2d   :  { %p318_p6 = pnand %p317_p5, %p311_p2 }
  0x2e   :  { %244 = vmatmul.mubr.msk.f32.vlgmr.msra.gmra.mrb[0].mxu0 %vm44_vm0, %v41_v7  ;;  %251 = vmatmul.mubr.msk.f32.vlgmr.msra.gmra.mrb[0].mxu1 %vm44_vm0, %v41_v7 }
 0x101   :  { %v245_v8 = vpop.f32.mrb[0].mxu0  ;;  %v252_v9 = vpop.f32.mrb[0].mxu1 }
 0x102   :  { %127 = vst [vmem:[#allocation7 + $0x8] sm:$0xff] %v245_v8  ;;  %v117_v10 = vpop.f32.mrb[1].mxu0  ;;  %208 = vst [vmem:[#allocation7 + $0x18] sm:$0xff] %v252_v9  ;;  %v197_v11 = vpop.f32.mrb[1].mxu1 }
 0x103   :  { %126 = vst [vmem:[#allocation7] sm:$0xff] %v117_v10  ;;  %207 = vst [vmem:[#allocation7 + $0x10] sm:$0xff] %v197_v11 }
 0x104   :  { %321 = shalt.err (!%p318_p6)
}
 0x105   :  { %s322_s10 = scalar_lea.hbm %s409_s2, 512 }
 0x106   :  { %p323_p7 = scmp.ne.s32.totalorder %s409_s2, %s322_s10  ;;  %p326_p8 = scmp.lt.u32.totalorder %s322_s10, %s409_s2 }
 0x108   :  { %p328_p9 = pnand %p326_p8, %p323_p7 }
 0x10a   :  { %331 = shalt.err (!%p328_p9)
}
 0x10b   :  { %220 = dma.vmem_to_hbm [thread:$0]  %s215_s6, 512, %s409_s2, [#allocation4], %s339_s19, %s339_s19, %s340_s20  }
 0x10c   :  { %336 = dma.done.wait [#allocation4], 512  }
 0x10d   :  { %337 = vsyncadd [#allocation4], 4294966784 }
 0x10e   :  { %224 = vsyncpa [#allocation3], 1 }
 0x10f   :  { %225 = vsyncpa [#allocation6], 1 }
 0x110   :  { %226 = vsyncpa [#allocation4], 1 }

</bundles_post_ra>
